<compile_context>
chip_gen: v7x
topology: tpu7x:2x2x1
jax: 0.10.0
libtpu: 0.0.40
codegen_flags: <defaults>
</compile_context>

<pallas_src>
import functools

import jax
import jax.numpy as jnp
from jax.experimental import pallas as pl
from jax.experimental.pallas import tpu as pltpu

_LANE = 128
_SUB = 8

# Tri-state cache: None = not probed yet, True/False = probe result for the
# in-kernel stride-2 lane de-interleave.
_INTERLEAVED_PATH_OK = None


def _round_up(x, m):
    return ((x + m - 1) // m) * m


def _masked_block_sum(chunk, block_rows, total_rows, needs_mask):
    """Zero padded rows of a partial last block, then reduce over rows."""
    if needs_mask:
        row = jax.lax.broadcasted_iota(jnp.int32, chunk.shape, 0)
        valid = (pl.program_id(0) * block_rows + row) < total_rows
        # True select (NOT multiply-by-mask): padding of the last partial
        # block holds stale garbage that may be NaN/inf.
        chunk = jnp.where(valid, chunk, 0.0)
    return jnp.sum(chunk, axis=0, keepdims=True)  # (1, _LANE)


def _interleaved_kernel(o_ref, w_ref, out_ref, *, block_rows, total_rows,
                        needs_mask):
    # o_ref: (block_rows, 128)  outputs, sample i of the row at lane i
    # w_ref: (block_rows, 256)  free row-major view of u_weights:
    #                           lane 2i = w0_i, lane 2i+1 = w1_i
    o = o_ref[...].astype(jnp.float32)
    w = w_ref[...].astype(jnp.float32)
    w0 = w[:, 0::2]          # stride-2 lane de-interleave (XLU/VPU slack)
    w1 = w[:, 1::2]
    chunk = w0 + o * (w1 - w0)               # == (1-o)*w0 + o*w1
    partial = _masked_block_sum(chunk, block_rows, total_rows, needs_mask)
    out_ref[...] = jnp.broadcast_to(partial, (_SUB, _LANE))


def _planar_kernel(o_ref, w_ref, out_ref, *, block_rows, total_rows,
                   needs_mask):
    # Fallback layout: w_ref is (2, block_rows, 128); w_ref[0]=w0, w_ref[1]=w1.
    o = o_ref[...].astype(jnp.float32)
    w0 = w_ref[0].astype(jnp.float32)
    w1 = w_ref[1].astype(jnp.float32)
    chunk = w0 + o * (w1 - w0)
    partial = _masked_block_sum(chunk, block_rows, total_rows, needs_mask)
    out_ref[...] = jnp.broadcast_to(partial, (_SUB, _LANE))


def _pick_block_rows(rows, max_block_rows):
    if rows > max_block_rows:
        return max_block_rows
    if rows >= 2 * _SUB:
        # Emit >= 2 grid steps so the "parallel" axis can shard across both
        # v7x TensorCores; costs nothing on single-TC chips.
        return _round_up(pl.cdiv(rows, 2), _SUB)
    return rows  # tiny input: one full-extent block


def _bulk_sum(o2, w2, kernel_fn, w_spec, rows, block_rows, grid_r, needs_mask):
    kernel = functools.partial(kernel_fn, block_rows=block_rows,
                               total_rows=rows, needs_mask=needs_mask)
    # Derived VMEM budget: double-buffered o + w blocks plus slack, clamped to
    # [32 MiB, 128 MiB] (safe on v7x's 64 MiB/TC at the 8192-row default).
    per_buf = (block_rows * _LANE * o2.dtype.itemsize
               + block_rows * 2 * _LANE * w2.dtype.itemsize)
    vmem_limit = int(min(128 << 20, max(32 << 20, 2 * per_buf + (4 << 20))))

    partials = pl.pallas_call(
        kernel,
        out_shape=jax.ShapeDtypeStruct((_SUB, grid_r * _LANE), jnp.float32),
        grid_spec=pltpu.PrefetchScalarGridSpec(
            num_scalar_prefetch=0,
            grid=(grid_r,),
            in_specs=[pl.BlockSpec((block_rows, _LANE), lambda g: (g, 0)),
                      w_spec],
            out_specs=pl.BlockSpec((_SUB, _LANE), lambda g: (0, g)),
        ),
        compiler_params=pltpu.CompilerParams(
            dimension_semantics=("parallel",),
            vmem_limit_bytes=vmem_limit,
        ),
    )(o2, w2)
    # Every row of each (8,128) output block holds that block's lane partials;
    # read row 0 and finish the tiny reduction in XLA.
    return jnp.sum(partials[0])


def _interleaved_supported():
    """One-time tiny probe: does the stride-2 lane slice lower on this Mosaic?"""
    global _INTERLEAVED_PATH_OK
    if _INTERLEAVED_PATH_OK is None:
        try:
            o = jnp.zeros((_SUB, _LANE), jnp.float32)
            w = jnp.zeros((_SUB, 2 * _LANE), jnp.float32)
            probe = _bulk_sum(o, w, _interleaved_kernel,
                              pl.BlockSpec((_SUB, 2 * _LANE), lambda g: (g, 0)),
                              rows=_SUB, block_rows=_SUB, grid_r=1,
                              needs_mask=False)
            jax.block_until_ready(probe)
            _INTERLEAVED_PATH_OK = True
        except Exception:
            _INTERLEAVED_PATH_OK = False
    return _INTERLEAVED_PATH_OK


def utility_loss(outputs, targets, u_weights, *, max_block_rows=8192):
    """Pallas implementation of UtilityLoss.forward.

    outputs:   (N,)   float
    targets:   (N,)   float  (unused by the reference forward; kept for parity)
    u_weights: (N, 2) float
    returns:   scalar float32 loss
    """
    del targets  # unused by the reference forward pass
    n = outputs.shape[0]

    bulk = (n // _LANE) * _LANE
    rows = bulk // _LANE
    total = jnp.zeros((), jnp.float32)

    if rows > 0:
        o2 = outputs[:bulk].reshape(rows, _LANE)          # free reshape
        block_rows = _pick_block_rows(rows, max_block_rows)
        grid_r = pl.cdiv(rows, block_rows)
        needs_mask = (rows % block_rows) != 0

        if _interleaved_supported():
            # Free (no-copy) row-major view: w0/w1 interleaved along 256 lanes.
            w2 = u_weights[:bulk].reshape(rows, 2 * _LANE)
            w_spec = pl.BlockSpec((block_rows, 2 * _LANE), lambda g: (g, 0))
            bulk_sum = _bulk_sum(o2, w2, _interleaved_kernel, w_spec,
                                 rows, block_rows, grid_r, needs_mask)
        else:
            # Fallback: one-time XLA transpose to a planar (2, rows, 128)
            # stream (one extra HBM pass over the weights).
            wt = u_weights[:bulk].T.reshape(2, rows, _LANE)
            w_spec = pl.BlockSpec((2, block_rows, _LANE), lambda g: (0, g, 0))
            bulk_sum = _bulk_sum(o2, wt, _planar_kernel, w_spec,
                                 rows, block_rows, grid_r, needs_mask)
        total = total + bulk_sum

    if bulk < n:
        # Sub-128-element tail in plain JAX: avoids a padding pass over the
        # whole array and keeps kernel blocks fully (8,128)-packed.
        o_t = outputs[bulk:].astype(jnp.float32)
        w_t = u_weights[bulk:].astype(jnp.float32)
        total = total + jnp.sum(w_t[:, 0] + o_t * (w_t[:, 1] - w_t[:, 0]))

    return -total


def utility_loss_ref(outputs, targets, u_weights):
    """Pure-JAX reference (mirror of the PyTorch forward)."""
    del targets
    o = outputs.astype(jnp.float32)
    w = u_weights.astype(jnp.float32)
    return -jnp.sum((1.0 - o) * w[:, 0] + o * w[:, 1])


if __name__ == "__main__":
    key = jax.random.PRNGKey(0)
    k1, k2, k3 = jax.random.split(key, 3)

    def make(n):
        o = jax.nn.sigmoid(jax.random.normal(k1, (n,), dtype=jnp.float32))
        t = (jax.random.uniform(k2, (n,)) > 0.5).astype(jnp.float32)
        w = jax.random.normal(k3, (n, 2), dtype=jnp.float32)
        return o, t, w

    # 1) Ragged: 11 full 128-lane rows + a 53-element tail; small block size to
    #    force a multi-step grid with a masked partial last block.
    o, t, w = make(11 * 128 + 53)
    loss = jax.block_until_ready(utility_loss(o, t, w, max_block_rows=8))
    ref = jax.block_until_ready(utility_loss_ref(o, t, w))
    assert jnp.allclose(loss, ref, rtol=1e-5, atol=1e-4), (loss, ref)

    # 2) Default block sizing; exercises the >=2-grid-step (v7x dual-TC) split.
    o, t, w = make(4096)
    loss = jax.block_until_ready(utility_loss(o, t, w))
    ref = jax.block_until_ready(utility_loss_ref(o, t, w))
    assert jnp.allclose(loss, ref, rtol=1e-5, atol=1e-4), (loss, ref)

    # 3) Tiny input (single full-extent block) and 4) pure-tail input.
    for n in (2 * 128, 96):
        o, t, w = make(n)
        loss = jax.block_until_ready(utility_loss(o, t, w))
        ref = jax.block_until_ready(utility_loss_ref(o, t, w))
        assert jnp.allclose(loss, ref, rtol=1e-5, atol=1e-4), (loss, ref)

    print("KERNEL_OK")
</pallas_src>

<mosaic_0001>
module attributes {stable_mosaic.version = 11 : i64} {
  func.func @_planar_kernel(%arg0: i32, %arg1: memref<8x128xf32, #tpu.memory_space<vmem>>, %arg2: memref<2x8x128xf32, #tpu.memory_space<vmem>>, %arg3: memref<8x128xf32, #tpu.memory_space<vmem>>) attributes {dimension_semantics = [#tpu.dimension_semantics<parallel>], iteration_bounds = array<i64: 2>, scalar_prefetch = 0 : i64, scratch_operands = 0 : i64, tpu.core_type = #tpu.core_type<tc>, window_params = [{transform_indices = @transform_0, window_bounds = array<i64: 8, 128>}, {transform_indices = @transform_1, window_bounds = array<i64: 2, 8, 128>}, {transform_indices = @transform_2, window_bounds = array<i64: 8, 128>}]} {
    %c0 = arith.constant 0 : index
    %c0_0 = arith.constant 0 : index
    %0 = vector.load %arg1[%c0, %c0_0] : memref<8x128xf32, #tpu.memory_space<vmem>>, vector<8x128xf32>
    %c0_1 = arith.constant 0 : index
    %c0_2 = arith.constant 0 : index
    %c0_3 = arith.constant 0 : index
    %1 = vector.load %arg2[%c0_1, %c0_2, %c0_3] : memref<2x8x128xf32, #tpu.memory_space<vmem>>, vector<1x8x128xf32>
    %2 = vector.shape_cast %1 : vector<1x8x128xf32> to vector<8x128xf32>
    %c1 = arith.constant 1 : index
    %c0_4 = arith.constant 0 : index
    %c0_5 = arith.constant 0 : index
    %3 = vector.load %arg2[%c1, %c0_4, %c0_5] : memref<2x8x128xf32, #tpu.memory_space<vmem>>, vector<1x8x128xf32>
    %4 = vector.shape_cast %3 : vector<1x8x128xf32> to vector<8x128xf32>
    %5 = arith.subf %4, %2 : vector<8x128xf32>
    %6 = arith.mulf %0, %5 : vector<8x128xf32>
    %7 = arith.addf %2, %6 : vector<8x128xf32>
    %8 = tpu.iota {dimensions = array<i32: 0>} : vector<8x128xi32>
    %c8_i32 = arith.constant 8 : i32
    %9 = arith.muli %arg0, %c8_i32 : i32
    %10 = vector.broadcast %9 : i32 to vector<8x128xi32>
    %11 = arith.addi %10, %8 : vector<8x128xi32>
    %c11_i32 = arith.constant 11 : i32
    %12 = vector.broadcast %c11_i32 : i32 to vector<8x128xi32>
    %13 = arith.cmpi slt, %11, %12 : vector<8x128xi32>
    %cst = arith.constant 0.000000e+00 : f32
    %14 = vector.broadcast %cst : f32 to vector<8x128xf32>
    %15 = arith.select %13, %7, %14 : vector<8x128xi1>, vector<8x128xf32>
    %cst_6 = arith.constant dense<0.000000e+00> : vector<128xf32>
    %16 = vector.multi_reduction <add>, %15, %cst_6 [0] : vector<8x128xf32> to vector<128xf32>
    %17 = vector.shape_cast %16 : vector<128xf32> to vector<1x128xf32>
    %18 = vector.shape_cast %17 : vector<1x128xf32> to vector<1x128xf32>
    %19 = vector.broadcast %18 : vector<1x128xf32> to vector<8x128xf32>
    %c0_7 = arith.constant 0 : index
    %c0_8 = arith.constant 0 : index
    %20 = vector.load %arg3[%c0_7, %c0_8] : memref<8x128xf32, #tpu.memory_space<vmem>>, vector<8x128xf32>
    tpu.vector_store %arg3[%c0_7, %c0_8], %19 {strides = array<i32>} : memref<8x128xf32, #tpu.memory_space<vmem>>, vector<8x128xf32>,
    return
  }
  func.func @transform_0(%arg0: i32) -> (i32, i32) {
    %c0_i32 = arith.constant 0 : i32
    %c0_i32_0 = arith.constant 0 : i32
    return %arg0, %c0_i32 : i32, i32
  }
  func.func @transform_1(%arg0: i32) -> (i32, i32, i32) {
    %c0_i32 = arith.constant 0 : i32
    %c0_i32_0 = arith.constant 0 : i32
    %c0_i32_1 = arith.constant 0 : i32
    return %c0_i32, %arg0, %c0_i32_0 : i32, i32, i32
  }
  func.func @transform_2(%arg0: i32) -> (i32, i32) {
    %c0_i32 = arith.constant 0 : i32
    %c0_i32_0 = arith.constant 0 : i32
    return %c0_i32, %arg0 : i32, i32
  }
}

</mosaic_0001>

<bundles_post_ra>
// kernel: tpu_custom_call.1
= control target key start
LH: loop header
LB: loop body
LE: loop exit
PB: predicated region body
PF: predicated region fallthrough
CT: control target
= control target key end

     0   :  { %7 = vsyncpa [#allocation4], 0  ;;  %s559_s0 = inlined_call_operand.vmem [shape: f32[11,128], index: 0, kind: input, shape index: {}]   ;;  %s560_s1 = inlined_call_operand.vmem [shape: f32[2,11,128], index: 1, kind: input, shape index: {}]   ;;  %s561_s2 = inlined_call_operand.hbm [shape: f32[8,256], index: 2, kind: output, shape index: {}]  }
   0x1   :  { %9 = vsyncpa [#allocation4 + $0x1], 0  ;;  %s443_s9 = smov 0   ;;  %s445_s10 = smov 0  }
   0x2   :  { %s447_s11 = smov 0   ;;  %s449_s12 = smov 0  }
   0x3 LB: > { %s464_s13 = sadd.s32 4294967295, %s425_s12   ;;  %s309_s14 = sadd.s32 4294967294, %s425_s12   ;;  %s425_s12 = sphi %s449_s12, %s567_s12   ;;  %s421_s11 = sphi %s447_s11, %s566_s11   ;;  %s417_s10 = sphi %s445_s10, %s565_s10   ;;  %s413_s9 = sphi %s443_s9, %s564_s9  }
   0x4   : > { %s468_s15 = sadd.s32 1, %s425_s12   ;;  %s48_s16 = sadd.s32 1, %s421_s11 }
   0x5   : > { %s45_s17 = ssub.s32 %s425_s12, %s468_s15  ;;  %p55_p0 = scmp.ne.s32.totalorder %s421_s11, %s417_s10 }
   0x6   : > { %p46_p1 = scmp.eq.s32.totalorder %s45_s17, 0  ;;  %p56_p2 = scmp.eq.s32.totalorder %s425_s12, 0 }
   0x7   : > { %p85_p3 = scmp.eq.s32.totalorder %s464_s13, 1  ;;  %p90_p4 = scmp.ne.s32.totalorder %s417_s10, %s413_s9 }
   0x8   : > { %s480_s18 = scalar_select %p46_p1, %s421_s11, %s48_s16  }
   0x9   : > { %p57_p5 = por %p56_p2, %p55_p0  ;;  %p482_p6 = por %p85_p3, %p55_p0 }
   0xa   : > { %p91_p7 = scmp.eq.s32.totalorder %s309_s14, 1  ;;  %p311_p9 = scmp.ge.s32.totalorder %s425_s12, 2 }
   0xc   : > { %p486_p8 = por %p91_p7, %p90_p4  ;;  %107 = sbr.rel (%p311_p9) target bundleno = 26 (0x1a), region = 16 }
  0x13   : > { %117 = sbr.rel (!%p57_p5) target bundleno = 26 (0x1a), region = 24  ;;  %s119_s21 = sand.u32 (%p57_p5), 1, %s421_s11  }
  0x14   : > { %s313_s22 = sshll.u32 (%p57_p5), %s425_s12, 3  ;;  %s312_s23 = sshll.u32 (%p57_p5), %s119_s21, 4 }
  0x15   : > { %s123_s26 = scalar_lea.vmem (%p57_p5), %s560_s1, %s313_s22  ;;  %s121_s27 = scalar_lea.vmem (%p57_p5), [#allocation2], %s312_s23 }
  0x16   : > { %v153_v0 = vld [vmem:[%s123_s26] sm:$0xff] (%p57_p5)  ;;  %v155_v1 = vld [vmem:[%s123_s26 + $0x10] sm:$0xff] (%p57_p5) }
  0x17   : > { %154 = vst [vmem:[%s121_s27] sm:$0xff] (%p57_p5), %v153_v0  ;;  %156 = vst [vmem:[%s121_s27 + $0x8] sm:$0xff] (%p57_p5), %v155_v1 }
  0x1a PF: > { %p314_p10 = scmp.ge.s32.totalorder %s425_s12, 1  ;;  %p161_p11 = scmp.lt.s32.totalorder %s425_s12, 3 }
  0x1c   : > { %p162_p12 = pnand %p314_p10, %p161_p11 }
  0x1d   : > { %s501_s28 = sand.u32 (!%p162_p12), 1, %s417_s10   ;;  %p193_p13 = scmp.lt.s32.totalorder (!%p162_p12), %s464_s13, 1  ;;  %v204_v2 = vlaneseq (!%p162_p12) }
  0x1e   : > { %165 = sbr.rel (%p162_p12) target bundleno = 73 (0x49), region = 62  ;;  %s315_s29 = sshll.u32 (!%p162_p12), %s501_s28, 4 }
  0x1f   : > { %v205_v3 = vshrl.u32 (!%p162_p12), %v204_v2, 7  ;;  %s170_s3 = scalar_lea.vmem (!%p162_p12), [#allocation2], %s315_s29  ;;  %s319_s4 = sshll.u32 (!%p162_p12), %s464_s13, 3 }
  0x20   : > { %v198_v4 = vld [vmem:[%s170_s3] sm:$0xff] (!%p162_p12)  ;;  %v318_v5 = vld [vmem:[%s170_s3 + $0x8] sm:$0xff] (!%p162_p12)  ;;  %v207_v7 = vstv (!%p162_p12), %s319_s4  ;;  %s316_s14 = sshll.u32 (!%p162_p12), %s501_s28, 3  ;;  %s321_s21 = sshll.u32 (!%p162_p12), %s464_s13, 7 }
  0x21   : > { %v201_v6 = vsub.f32 (!%p162_p12), %v318_v5, %v198_v4  ;;  %v208_v8 = vadd.s32 (!%p162_p12), %v207_v7, %v205_v3  ;;  %s192_s16 = scalar_lea.vmem (!%p162_p12), [#allocation3], %s316_s14  ;;  %s517_s24 = scalar_lea.hbm (!%p162_p12), %s561_s2, %s321_s21 }
  0x22   : > { %s232_s17 = sshll.u32 (!%p162_p12), %s192_s16, 4  ;;  %s219_s25 = scalar_lea.sflag (!%p162_p12), [#allocation4], %s501_s28  ;;  %s512_s17 = int_to_ptr.vmem [resolvable:$true] %s232_s17 }
  0x23   : > { %vm209_vm0 = vcmp.lt.s32.totalorder (!%p162_p12), %v208_v8, 11  ;;  %s363_s26 = scalar_lea.vmem (!%p162_p12), %s512_s17, 128 }
  0x24   : > { %p364_p0 = scmp.ne.s32.totalorder (!%p162_p12), %s512_s17, %s363_s26 }
  0x25   : > { %s194_s30 = scalar_select %p193_p13, %s464_s13, 1 }
  0x26   : > { %p365_p1 = pnand %p364_p0, %p482_p6  ;;  %s427_s13 = smov [#allocation3]  }
  0x27   : > { %s317_s5 = sshll.u32 %s194_s30, 3  ;;  %s367_s27 = sshll.u32 %s427_s13, 4  ;;  %s368_s27 = int_to_ptr.vmem [resolvable:$false] %s367_s27 }
  0x28   : > { %s196_s8 = scalar_lea.vmem %s559_s0, %s317_s5  ;;  %p366_p2 = pneg %p365_p1 }
  0x29   : > { %v197_v9 = vld [vmem:[%s196_s8] sm:$0xff]  ;;  %s369_s29 = scalar_lea.vmem %s368_s27, 256  ;;  %p370_p3 = scmp.lt.s32.totalorder %s512_s17, %s368_s27 }
  0x2a   : > { %v202_v10 = vmul.f32 %v201_v6, %v197_v9  ;;  %p371_p4 = scmp.lt.s32.totalorder %s369_s29, %s363_s26 }
  0x2c   : > { %v203_v11 = vadd.f32 %v202_v10, %v198_v4  ;;  %p372_p5 = por %p371_p4, %p370_p3 }
  0x2e   : > { %v210_v12 = vsel %vm209_vm0, %v203_v11, 0.0  ;;  %p373_p7 = pnand %p372_p5, %p366_p2 }
  0x2f   : > { %v211_v13 = vrot.slane %v210_v12, 4 }
  0x31   : > { %v212_v14 = vadd.f32 %v211_v13, %v210_v12 }
  0x33   : > { %v213_v15 = vrot.slane %v212_v14, 2 }
  0x35   : > { %v214_v16 = vadd.f32 %v213_v15, %v212_v14 }
  0x37   : > { %v215_v17 = vrot.slane %v214_v16, 1 }
  0x39   : > { %v216_v18 = vadd.f32 %v215_v17, %v214_v16 }
  0x3b   : > { %217 = vst [vmem:[%s192_s16] sm:$0xff] %v216_v18 }
  0x3c   : > { %376 = shalt.err (!%p373_p7)
}
  0x3d   : > { %s377_s28 = scalar_lea.hbm %s517_s24, 128  ;;  %s381_s4 = scalar_lea.hbm %s561_s2, 256 }
  0x3e   : > { %p378_p10 = scmp.ne.s32.totalorder %s517_s24, %s377_s28  ;;  %p382_p13 = scmp.lt.u32.totalorder %s517_s24, %s561_s2 }
  0x3f   : > { %p383_p0 = scmp.lt.u32.totalorder %s381_s4, %s377_s28  ;;  %p385_p2 = scmp.lt.u32.totalorder %s377_s28, %s517_s24 }
  0x40   : > { %p379_p11 = pnand %p378_p10, %p482_p6 }
  0x41   : > { %p384_p1 = por %p383_p0, %p382_p13 }
  0x42   : > { %p380_p12 = pneg %p379_p11 }
  0x43   : > { %p386_p3 = por %p385_p2, %p384_p1 }
  0x45   : > { %p387_p4 = pnand %p386_p3, %p380_p12 }
  0x47   : > { %390 = shalt.err (!%p387_p4)
}
  0x48   : > { %324 = dma.vmem_to_hbm [thread:$0]  (%p482_p6), %s512_s17, 128, %s517_s24, %s219_s25  }
  0x49 PF: > { %s244_s7 = sand.u32 1, %s413_s9   ;;  %p327_p5 = pnand %p311_p9, %p486_p8 }
  0x4a   : > { %s245_s8 = scalar_lea.sflag [#allocation4], %s244_s7 }
  0x4b   : > { %408 = dma.done.wait (!%p327_p5), %s245_s8, 128  }
  0x4c   : > { %410 = vsyncadd (!%p327_p5), %s245_s8, 4294967168  ;;  %p12_p7 = scmp.ge.s32.totalorder %s468_s15, 4   ;;  %s564_s9 = smov %s417_s10 }
  0x4d   : > { %s565_s10 = smov %s421_s11  ;;  %s566_s11 = smov %s480_s18 }
  0x4e   : > { %s567_s12 = smov %s468_s15  ;;  %14 = sbr.rel (!%p12_p7) target bundleno = 3 (0x3), region = 110 }
  0x55   :  { %250 = vsyncpa [#allocation4], 1 }
  0x56   :  { %252 = vsyncpa [#allocation4 + $0x1], 1 }

</bundles_post_ra>
